<compile_context>
chip_gen: v6e
topology: v6e:2x2x1
jax: 0.10.0
libtpu: 0.0.40
codegen_flags: <defaults>
</compile_context>

<pallas_src>
import jax
import jax.numpy as jnp
from jax.experimental import pallas as pl
from jax.experimental.pallas import tpu as pltpu


def _round_up(x: int, m: int) -> int:
    return ((x + m - 1) // m) * m


def _autoencoder_kernel(x_ref, w1_ref, b1_ref, w2_ref, b2_ref, o_ref):
    # encoder: h = relu(x @ W1 + b1)    (bf16 MXU operands, f32 accumulate)
    h = jnp.dot(x_ref[...], w1_ref[...], preferred_element_type=jnp.float32)
    h = jnp.maximum(h + b1_ref[...], 0.0)          # f32 VPU work
    # decoder: y = sigmoid(h @ W2 + b2)
    y = jnp.dot(h.astype(jnp.bfloat16), w2_ref[...],
                preferred_element_type=jnp.float32)
    y = y + b2_ref[...]
    o_ref[...] = jax.nn.sigmoid(y).astype(o_ref.dtype)   # f32 EUP sigmoid


def _pad2(a, rows, cols, dtype):
    """Zero-pad a 2-D array to (rows, cols) and cast to dtype (no-op if exact)."""
    r, c = a.shape
    a = a.astype(dtype)
    if r == rows and c == cols:
        return a
    return jnp.zeros((rows, cols), dtype).at[:r, :c].set(a)


def autoencoder_forward(x, w1, b1, w2, b2, *, block_b=256):
    """x: (B, F) f32; w1: (F, H); b1: (1, H); w2: (H, F); b2: (1, F)."""
    B, F = x.shape
    H = w1.shape[1]
    assert w1.shape == (F, H) and b1.shape == (1, H)
    assert w2.shape == (H, F) and b2.shape == (1, F)

    # Lane-dense padding: last dims to multiples of 128 (vreg lane width /
    # MXU N), batch tile to a multiple of 16 (bf16 sublane packing).
    Fp = _round_up(F, 128)
    Hp = _round_up(H, 128)
    if B <= block_b:
        TB = _round_up(B, 16)
        Bp = TB
    else:
        TB = _round_up(block_b, 16)
        Bp = _round_up(B, TB)
    n_tiles = pl.cdiv(Bp, TB)

    # Zero-pad + cast: bf16 matmul operands, f32 biases.
    x_p = _pad2(x, Bp, Fp, jnp.bfloat16)
    w1_p = _pad2(w1, Fp, Hp, jnp.bfloat16)
    b1_p = _pad2(b1, 1, Hp, jnp.float32)
    w2_p = _pad2(w2, Hp, Fp, jnp.bfloat16)
    b2_p = _pad2(b2, 1, Fp, jnp.float32)

    # Explicit VMEM budget (double-buffered x/out tiles + resident weights +
    # intermediates), with headroom, clamped to stay inside v7x's 64 MiB VMEM.
    vmem_est = (
        2 * TB * Fp * 2                   # x tile, bf16, double-buffered
        + 2 * TB * Fp * 4                 # out tile, f32, double-buffered
        + 2 * (Fp * Hp + Hp * Fp) * 2     # W1/W2 bf16 (2 buffers each, worst case)
        + 2 * (Hp + Fp) * 4               # biases f32
        + TB * Hp * (4 + 2)               # h intermediate (f32 + bf16 copy)
        + TB * Fp * 4                     # y intermediate (f32)
    )
    vmem_limit = int(min(max(4 * vmem_est, 16 << 20), 64 << 20))

    cost = pl.CostEstimate(
        flops=2 * Bp * (Fp * Hp + Hp * Fp),
        transcendentals=Bp * Fp,          # sigmoid
        bytes_accessed=(Bp * Fp * 2 + Fp * Hp * 2 + Hp * Fp * 2
                        + Hp * 4 + Fp * 4 + Bp * Fp * 4),
    )

    out_p = pl.pallas_call(
        _autoencoder_kernel,
        out_shape=jax.ShapeDtypeStruct((Bp, Fp), jnp.float32),
        grid_spec=pltpu.PrefetchScalarGridSpec(
            num_scalar_prefetch=0,
            grid=(n_tiles,),
            in_specs=[
                pl.BlockSpec((TB, Fp), lambda i: (i, 0)),   # x: batch-tiled
                pl.BlockSpec((Fp, Hp), lambda i: (0, 0)),   # W1: VMEM-resident
                pl.BlockSpec((1, Hp), lambda i: (0, 0)),    # b1: VMEM-resident
                pl.BlockSpec((Hp, Fp), lambda i: (0, 0)),   # W2: VMEM-resident
                pl.BlockSpec((1, Fp), lambda i: (0, 0)),    # b2: VMEM-resident
            ],
            out_specs=pl.BlockSpec((TB, Fp), lambda i: (i, 0)),
        ),
        compiler_params=pltpu.CompilerParams(
            dimension_semantics=("parallel",),   # batch tiles are independent
            vmem_limit_bytes=vmem_limit,
        ),
        cost_estimate=cost,
    )(x_p, w1_p, b1_p, w2_p, b2_p)

    # Slice away batch / feature padding.
    return out_p[:B, :F]


def _reference(x, w1, b1, w2, b2):
    h = jnp.maximum(x @ w1 + b1, 0.0)
    return jax.nn.sigmoid(h @ w2 + b2)


if __name__ == "__main__":
    # Small shapes consistent with the module: batch=8, in_features=32, hidden=16.
    B, F, H = 8, 32, 16

    key = jax.random.PRNGKey(0)
    kx, kw1, kb1, kw2, kb2 = jax.random.split(key, 5)

    x = jax.random.normal(kx, (B, F), dtype=jnp.float32)
    # Deterministic parameter init (synthetic weights, not a checkpoint).
    w1 = jax.random.normal(kw1, (F, H), dtype=jnp.float32) * 0.1
    b1 = jax.random.normal(kb1, (1, H), dtype=jnp.float32) * 0.1
    w2 = jax.random.normal(kw2, (H, F), dtype=jnp.float32) * 0.1
    b2 = jax.random.normal(kb2, (1, F), dtype=jnp.float32) * 0.1

    out = autoencoder_forward(x, w1, b1, w2, b2)
    out = jax.block_until_ready(out)

    ref = _reference(x, w1, b1, w2, b2)
    assert out.shape == (B, F)
    # bf16 matmul operands (f32 accumulation) => loose tolerance vs f32 reference.
    assert jnp.allclose(out, ref, atol=2e-2, rtol=2e-2), "mismatch vs reference"

    # Also exercise the multi-tile (batch-tiled) path with a non-aligned batch.
    B2 = 300
    x2 = jax.random.normal(jax.random.PRNGKey(1), (B2, F), dtype=jnp.float32)
    out2 = jax.block_until_ready(autoencoder_forward(x2, w1, b1, w2, b2, block_b=128))
    ref2 = _reference(x2, w1, b1, w2, b2)
    assert out2.shape == (B2, F)
    assert jnp.allclose(out2, ref2, atol=2e-2, rtol=2e-2), "mismatch (tiled path)"

    print("KERNEL_OK")
</pallas_src>

<mosaic_0001>
module attributes {stable_mosaic.version = 11 : i64} {
  func.func @_autoencoder_kernel(%arg0: i32, %arg1: memref<16x128xbf16, #tpu.memory_space<vmem>>, %arg2: memref<128x128xbf16, #tpu.memory_space<vmem>>, %arg3: memref<1x128xf32, #tpu.memory_space<vmem>>, %arg4: memref<128x128xbf16, #tpu.memory_space<vmem>>, %arg5: memref<1x128xf32, #tpu.memory_space<vmem>>, %arg6: memref<16x128xf32, #tpu.memory_space<vmem>>) attributes {dimension_semantics = [#tpu.dimension_semantics<parallel>], iteration_bounds = array<i64: 1>, scalar_prefetch = 0 : i64, scratch_operands = 0 : i64, tpu.core_type = #tpu.core_type<tc>, window_params = [{transform_indices = @transform_0, window_bounds = array<i64: 16, 128>}, {pipeline_mode = #tpu.pipeline_mode<synchronous>, transform_indices = @transform_1, window_bounds = array<i64: 128, 128>}, {pipeline_mode = #tpu.pipeline_mode<synchronous>, transform_indices = @transform_2, window_bounds = array<i64: 1, 128>}, {pipeline_mode = #tpu.pipeline_mode<synchronous>, transform_indices = @transform_3, window_bounds = array<i64: 128, 128>}, {pipeline_mode = #tpu.pipeline_mode<synchronous>, transform_indices = @transform_4, window_bounds = array<i64: 1, 128>}, {transform_indices = @transform_5, window_bounds = array<i64: 16, 128>}]} {
    %c0 = arith.constant 0 : index
    %c0_0 = arith.constant 0 : index
    %0 = vector.load %arg1[%c0, %c0_0] : memref<16x128xbf16, #tpu.memory_space<vmem>>, vector<16x128xbf16>
    %c0_1 = arith.constant 0 : index
    %c0_2 = arith.constant 0 : index
    %1 = vector.load %arg2[%c0_1, %c0_2] : memref<128x128xbf16, #tpu.memory_space<vmem>>, vector<128x128xbf16>
    %cst = arith.constant dense<0.000000e+00> : vector<16x128xf32>
    %2 = tpu.matmul %0, %1, %cst {dimension_numbers = #tpu.dot_dimension_numbers<[1], [0], [0], [1], [0, 0, 1, 1], [], []>} : vector<16x128xbf16>, vector<128x128xbf16>, vector<16x128xf32> -> vector<16x128xf32>
    %c0_3 = arith.constant 0 : index
    %c0_4 = arith.constant 0 : index
    %3 = vector.load %arg3[%c0_3, %c0_4] : memref<1x128xf32, #tpu.memory_space<vmem>>, vector<1x128xf32>
    %4 = vector.broadcast %3 : vector<1x128xf32> to vector<16x128xf32>
    %5 = arith.addf %2, %4 : vector<16x128xf32>
    %cst_5 = arith.constant 0.000000e+00 : f32
    %6 = vector.broadcast %cst_5 : f32 to vector<16x128xf32>
    %7 = arith.maximumf %5, %6 : vector<16x128xf32>
    %8 = arith.truncf %7 : vector<16x128xf32> to vector<16x128xbf16>
    %c0_6 = arith.constant 0 : index
    %c0_7 = arith.constant 0 : index
    %9 = vector.load %arg4[%c0_6, %c0_7] : memref<128x128xbf16, #tpu.memory_space<vmem>>, vector<128x128xbf16>
    %cst_8 = arith.constant dense<0.000000e+00> : vector<16x128xf32>
    %10 = tpu.matmul %8, %9, %cst_8 {dimension_numbers = #tpu.dot_dimension_numbers<[1], [0], [0], [1], [0, 0, 1, 1], [], []>} : vector<16x128xbf16>, vector<128x128xbf16>, vector<16x128xf32> -> vector<16x128xf32>
    %c0_9 = arith.constant 0 : index
    %c0_10 = arith.constant 0 : index
    %11 = vector.load %arg5[%c0_9, %c0_10] : memref<1x128xf32, #tpu.memory_space<vmem>>, vector<1x128xf32>
    %12 = vector.broadcast %11 : vector<1x128xf32> to vector<16x128xf32>
    %13 = arith.addf %10, %12 : vector<16x128xf32>
    %14 = arith.negf %13 : vector<16x128xf32>
    %15 = math.exp %14 : vector<16x128xf32>
    %cst_11 = arith.constant 1.000000e+00 : f32
    %16 = vector.broadcast %cst_11 : f32 to vector<16x128xf32>
    %17 = arith.addf %16, %15 : vector<16x128xf32>
    %18 = arith.divf %16, %17 : vector<16x128xf32>
    %c0_12 = arith.constant 0 : index
    %c0_13 = arith.constant 0 : index
    %19 = vector.load %arg6[%c0_12, %c0_13] : memref<16x128xf32, #tpu.memory_space<vmem>>, vector<16x128xf32>
    tpu.vector_store %arg6[%c0_12, %c0_13], %18 {strides = array<i32>} : memref<16x128xf32, #tpu.memory_space<vmem>>, vector<16x128xf32>,
    return
  }
  func.func @transform_0(%arg0: i32) -> (i32, i32) {
    %c0_i32 = arith.constant 0 : i32
    %c0_i32_0 = arith.constant 0 : i32
    return %arg0, %c0_i32 : i32, i32
  }
  func.func @transform_1(%arg0: i32) -> (i32, i32) {
    %c0_i32 = arith.constant 0 : i32
    %c0_i32_0 = arith.constant 0 : i32
    %c0_i32_1 = arith.constant 0 : i32
    return %c0_i32, %c0_i32_0 : i32, i32
  }
  func.func @transform_2(%arg0: i32) -> (i32, i32) {
    %c0_i32 = arith.constant 0 : i32
    %c0_i32_0 = arith.constant 0 : i32
    %c0_i32_1 = arith.constant 0 : i32
    return %c0_i32, %c0_i32_0 : i32, i32
  }
  func.func @transform_3(%arg0: i32) -> (i32, i32) {
    %c0_i32 = arith.constant 0 : i32
    %c0_i32_0 = arith.constant 0 : i32
    %c0_i32_1 = arith.constant 0 : i32
    return %c0_i32, %c0_i32_0 : i32, i32
  }
  func.func @transform_4(%arg0: i32) -> (i32, i32) {
    %c0_i32 = arith.constant 0 : i32
    %c0_i32_0 = arith.constant 0 : i32
    %c0_i32_1 = arith.constant 0 : i32
    return %c0_i32, %c0_i32_0 : i32, i32
  }
  func.func @transform_5(%arg0: i32) -> (i32, i32) {
    %c0_i32 = arith.constant 0 : i32
    %c0_i32_0 = arith.constant 0 : i32
    return %arg0, %c0_i32 : i32, i32
  }
}

</mosaic_0001>

<bundles_post_ra>
// kernel: tpu_custom_call.1
= control target key start
LH: loop header
LB: loop body
LE: loop exit
PB: predicated region body
PF: predicated region fallthrough
CT: control target
= control target key end

     0   :  { %10 = vsyncpa [#allocation3], 0  ;;  %s588_s0 = inlined_call_operand.hbm [shape: bf16[16,128], index: 0, kind: input, shape index: {}]   ;;  %s589_s1 = inlined_call_operand.hbm [shape: bf16[128,128], index: 1, kind: input, shape index: {}]   ;;  %s590_s2 = inlined_call_operand.vmem [shape: f32[1,128], index: 2, kind: input, shape index: {}]   ;;  %s591_s3 = inlined_call_operand.hbm [shape: bf16[128,128], index: 3, kind: input, shape index: {}]   ;;  %s592_s4 = inlined_call_operand.vmem [shape: f32[1,128], index: 4, kind: input, shape index: {}]   ;;  %s593_s5 = inlined_call_operand.hbm [shape: f32[16,128], index: 5, kind: output, shape index: {}]  }
   0x1   :  { %11 = vsyncpa [#allocation6], 0 }
   0x2   :  { %12 = vsyncpa [#allocation4], 0  ;;  %s530_s18 = smov [#allocation5]   ;;  %s531_s20 = smov [#allocation2]  }
   0x3   :  { %s30_s19 = sshll.u32 %s530_s18, 4  ;;  %s18_s21 = sshll.u32 %s531_s20, 4  ;;  %s31_s19 = int_to_ptr.vmem [resolvable:$true] %s30_s19  ;;  %s19_s21 = int_to_ptr.vmem [resolvable:$true] %s18_s21 }
   0x4   :  { %s452_s22 = scalar_lea.vmem %s31_s19, 1024  ;;  %p457_p1 = scmp.lt.s32.totalorder %s31_s19, %s31_s19 }
   0x5   :  { %p453_p0 = scmp.ne.s32.totalorder %s31_s19, %s452_s22  ;;  %p458_p2 = scmp.lt.s32.totalorder %s452_s22, %s452_s22 }
   0x7   :  { %p459_p3 = por %p458_p2, %p457_p1 }
   0x9   :  { %p460_p4 = pnand %p459_p3, %p453_p0 }
   0xb   :  { %463 = shalt.err (!%p460_p4)
}
   0xc   :  { %s532_s23 = smov 64   ;;  %s533_s24 = smov 4  }
   0xd   :  { %36 = dma.hbm_to_vmem [thread:$0]  %s589_s1, 1024, %s31_s19, [#allocation6], %s532_s23, %s532_s23, %s533_s24  }
   0xe   :  { %s472_s27 = scalar_lea.vmem %s19_s21, 128  ;;  %p477_p6 = scmp.lt.s32.totalorder %s19_s21, %s19_s21 }
   0xf   :  { %p473_p5 = scmp.ne.s32.totalorder %s19_s21, %s472_s27  ;;  %p478_p7 = scmp.lt.s32.totalorder %s472_s27, %s472_s27 }
  0x11   :  { %p479_p8 = por %p478_p7, %p477_p6 }
  0x13   :  { %p480_p9 = pnand %p479_p8, %p473_p5 }
  0x15   :  { %483 = shalt.err (!%p480_p9)
}
  0x16   :  { %24 = dma.hbm_to_vmem [thread:$0]  %s588_s0, 128, %s19_s21, [#allocation3], %s532_s23, %s532_s23, %s533_s24  }
  0x17   :  { %s534_s30 = smov [#allocation7]  }
  0x18   :  { %s44_s6 = sshll.u32 %s534_s30, 4  ;;  %s45_s6 = int_to_ptr.vmem [resolvable:$true] %s44_s6 }
  0x19   :  { %s492_s7 = scalar_lea.vmem %s45_s6, 1024  ;;  %p497_p11 = scmp.lt.s32.totalorder %s45_s6, %s45_s6 }
  0x1a   :  { %p493_p10 = scmp.ne.s32.totalorder %s45_s6, %s492_s7  ;;  %p498_p12 = scmp.lt.s32.totalorder %s492_s7, %s492_s7 }
  0x1c   :  { %p499_p13 = por %p498_p12, %p497_p11 }
  0x1e   :  { %p500_p0 = pnand %p499_p13, %p493_p10 }
  0x20   :  { %503 = shalt.err (!%p500_p0)
}
  0x21   :  { %50 = dma.hbm_to_vmem [thread:$0]  %s591_s3, 1024, %s45_s6, [#allocation6], %s532_s23, %s532_s23, %s533_s24  }
  0x22   :  { %524 = dma.done.wait [#allocation3], 128  }
  0x23   :  { %525 = vsyncadd [#allocation3], 4294967168 }
  0x24   :  { %526 = dma.done.wait [#allocation6], 2048  }
  0x25   :  { %527 = vsyncadd [#allocation6], 4294965248  ;;  %v535_v0 = vmov 0.0   ;;  %vm536_vm0 = vmmov 0   ;;  %v419_v1 = vld [vmem:[#allocation5 + $0x38] sm:$0xff]   ;;  %v420_v2 = vld [vmem:[#allocation5 + $0x30] sm:$0xff]  }
  0x26   :  { %369 = vmatprep.subr.bf16.mxu0 %v535_v0  ;;  %385 = vmatprep.mubr.msk.bf16.mxu0 %vm536_vm0, %v535_v0  ;;  %v421_v3 = vld [vmem:[#allocation5 + $0x28] sm:$0xff]   ;;  %v428_v4 = vld [vmem:[#allocation7 + $0x38] sm:$0xff]   ;;  %v422_v5 = vld [vmem:[#allocation5 + $0x20] sm:$0xff]  }
  0x27   :  { %389 = vmatprep.subr.bf16.mxu1 %v535_v0  ;;  %405 = vmatprep.mubr.msk.bf16.mxu1 %vm536_vm0, %v535_v0  ;;  %v429_v6 = vld [vmem:[#allocation7 + $0x30] sm:$0xff]   ;;  %v423_v7 = vld [vmem:[#allocation5 + $0x18] sm:$0xff]   ;;  %v430_v8 = vld [vmem:[#allocation7 + $0x28] sm:$0xff]  }
  0x28   :  { %370 = vmatpush3.bf16.msra.mxu0 %v419_v1  ;;  %390 = vmatpush3.bf16.msra.mxu1 %v428_v4  ;;  %v424_v9 = vld [vmem:[#allocation5 + $0x10] sm:$0xff]   ;;  %v431_v10 = vld [vmem:[#allocation7 + $0x20] sm:$0xff]   ;;  %v425_v11 = vld [vmem:[#allocation5 + $0x8] sm:$0xff]  }
  0x29   :  { %371 = vmatprep.subr.bf16.mxu0 %v535_v0  ;;  %391 = vmatprep.subr.bf16.mxu1 %v535_v0  ;;  %v432_v12 = vld [vmem:[#allocation7 + $0x18] sm:$0xff]   ;;  %v426_v13 = vld [vmem:[#allocation5] sm:$0xff]   ;;  %v433_v15 = vld [vmem:[#allocation7 + $0x10] sm:$0xff]  }
  0x2a   :  { %v427_v14 = vld [vmem:[#allocation2] sm:$0xff]   ;;  %v434_v16 = vld [vmem:[#allocation7 + $0x8] sm:$0xff]   ;;  %v435_v17 = vld [vmem:[#allocation7] sm:$0xff]  }
  0x2b   :  { %v330_v18 = vld [vmem:[%s590_s2] ss:$0 sm:$0xff]  ;;  %s537_s2 = smov [#allocation8]  }
  0x2c   :  { %372 = vmatpush3.bf16.msra.mxu0 %v420_v2  ;;  %392 = vmatpush3.bf16.msra.mxu1 %v429_v6  ;;  %v340_v28 = vld [vmem:[%s592_s4] ss:$0 sm:$0xff]  ;;  %s317_s11 = sshll.u32 %s537_s2, 4  ;;  %s318_s11 = int_to_ptr.vmem [resolvable:$true] %s317_s11 }
  0x2d   :  { %373 = vmatprep.subr.bf16.mxu0 %v535_v0  ;;  %393 = vmatprep.subr.bf16.mxu1 %v535_v0  ;;  %s504_s4 = scalar_lea.vmem %s318_s11, 256  ;;  %p509_p2 = scmp.lt.s32.totalorder %s318_s11, %s318_s11 }
  0x2e   :  { %p505_p1 = scmp.ne.s32.totalorder %s318_s11, %s504_s4  ;;  %p510_p3 = scmp.lt.s32.totalorder %s504_s4, %s504_s4 }
  0x30   :  { %374 = vmatpush3.bf16.msra.mxu0 %v421_v3  ;;  %394 = vmatpush3.bf16.msra.mxu1 %v430_v8  ;;  %p511_p4 = por %p510_p3, %p509_p2 }
  0x31   :  { %375 = vmatprep.subr.bf16.mxu0 %v535_v0  ;;  %395 = vmatprep.subr.bf16.mxu1 %v535_v0 }
  0x32   :  { %p512_p5 = pnand %p511_p4, %p505_p1 }
  0x34   :  { %376 = vmatpush3.bf16.msra.mxu0 %v422_v5  ;;  %396 = vmatpush3.bf16.msra.mxu1 %v431_v10 }
  0x35   :  { %377 = vmatprep.subr.bf16.mxu0 %v535_v0  ;;  %397 = vmatprep.subr.bf16.mxu1 %v535_v0 }
  0x38   :  { %378 = vmatpush3.bf16.msra.mxu0 %v423_v7  ;;  %398 = vmatpush3.bf16.msra.mxu1 %v432_v12 }
  0x39   :  { %379 = vmatprep.subr.bf16.mxu0 %v535_v0  ;;  %399 = vmatprep.subr.bf16.mxu1 %v535_v0 }
  0x3c   :  { %380 = vmatpush3.bf16.msra.mxu0 %v424_v9  ;;  %400 = vmatpush3.bf16.msra.mxu1 %v433_v15 }
  0x3d   :  { %381 = vmatprep.subr.bf16.mxu0 %v535_v0  ;;  %401 = vmatprep.subr.bf16.mxu1 %v535_v0 }
  0x40   :  { %382 = vmatpush3.bf16.msra.mxu0 %v425_v11  ;;  %402 = vmatpush3.bf16.msra.mxu1 %v434_v16 }
  0x41   :  { %383 = vmatprep.subr.bf16.mxu0 %v535_v0  ;;  %403 = vmatprep.subr.bf16.mxu1 %v535_v0 }
  0x44   :  { %384 = vmatpush3.bf16.msra.mxu0 %v426_v13  ;;  %404 = vmatpush3.bf16.msra.mxu1 %v435_v17 }
  0x47   :  { %386 = vmatmul.mubr.bf16.vlgmr.msra.gmra.mxu0 %v427_v14 }
 0x107   :  { %v176_v19 = vpop.f32.mrf.mxu0 }
 0x108   :  { %v177_v21 = vadd.f32 %v330_v18, %v176_v19 }
 0x109   :  { %v387_v20 = vpop.f32.mrf.mxu0 }
 0x10a   :  { %v183_v25 = vmax.f32 %v177_v21, 0.0 }
 0x10b   :  { %v179_v22 = vpop.f32.mrf.mxu0 }
 0x10c   :  { %v180_v23 = vadd.f32 %v330_v18, %v179_v22 }
 0x10d   :  { %v388_v24 = vpop.f32.mrf.mxu0 }
 0x10e   :  { %v184_v26 = vmax.f32 %v180_v23, 0.0 }
 0x110   :  { %v185_v27 = vpack.c.bf16 %v184_v26, %v183_v25 }
 0x112   :  { %406 = vmatmul.mubr.bf16.vlgmr.msra.gmra.mxu1 %v185_v27 }
 0x1d2   :  { %v291_v29 = vpop.f32.mrf.mxu1 }
 0x1d3   :  { %v292_v30 = vadd.f32 %v340_v28, %v291_v29 }
 0x1d4   :  { %v407_v31 = vpop.f32.mrf.mxu1 }
 0x1d5   :  { %v349_v32 = vmul.f32 -1.442695, %v292_v30 }
 0x1d6   :  { %v294_v33 = vpop.f32.mrf.mxu1 }
 0x1d7   :  { %436 = vpow2.f32 %v349_v32  ;;  %v295_v34 = vadd.f32 %v340_v28, %v294_v33 }
 0x1d8   :  { %v408_v35 = vpop.f32.mrf.mxu1 }
 0x1d9   :  { %v350_v36 = vmul.f32 -1.442695, %v295_v34 }
 0x1db   :  { %438 = vpow2.f32 %v350_v36 }
 0x1e4   :  { %v437_v37 = vpop.eup %436 }
 0x1e5   :  { %v304_v38 = vadd.f32 1.0, %v437_v37 }
 0x1e7   :  { %440 = vrcp.f32 %v304_v38 }
 0x1e8   :  { %v439_v39 = vpop.eup %438 }
 0x1e9   :  { %v305_v40 = vadd.f32 1.0, %v439_v39 }
 0x1eb   :  { %442 = vrcp.f32 %v305_v40 }
 0x1f4   :  { %v441_v41 = vpop.eup %440 }
 0x1f5   :  { %310 = vst [vmem:[#allocation8] sm:$0xff] %v441_v41 }
 0x1f8   :  { %v443_v42 = vpop.eup %442 }
 0x1f9   :  { %311 = vst [vmem:[#allocation8 + $0x8] sm:$0xff] %v443_v42 }
 0x1fa   :  { %515 = shalt.err (!%p512_p5)
}
 0x1fb   :  { %s538_s12 = smov 128   ;;  %s539_s13 = smov 8  }
 0x1fc   :  { %323 = dma.vmem_to_hbm [thread:$0]  %s318_s11, 256, %s593_s5, [#allocation4], %s538_s12, %s538_s12, %s539_s13  }
 0x1fd   :  { %528 = dma.done.wait [#allocation4], 256  }
 0x1fe   :  { %529 = vsyncadd [#allocation4], 4294967040 }
 0x1ff   :  { %327 = vsyncpa [#allocation3], 1 }
 0x200   :  { %328 = vsyncpa [#allocation6], 1 }
 0x201   :  { %329 = vsyncpa [#allocation4], 1 }

</bundles_post_ra>
